<compile_context>
chip_gen: v7x
topology: tpu7x:2x2x1
jax: 0.10.0
libtpu: 0.0.40
codegen_flags: <defaults>
</compile_context>

<pallas_src>
import jax
import jax.numpy as jnp
from jax.experimental import pallas as pl
from jax.experimental.pallas import tpu as pltpu

LN_EPS = 1e-5  # PyTorch nn.LayerNorm default


# ---------------------------------------------------------------------------
# Fused Pallas kernel: [VSA-folded] hidden stack (+ optional softmax head)
# ---------------------------------------------------------------------------
def _layernorm(y, g, beta):
    # Two-moment variance: two independent reductions instead of
    # reduce -> broadcast -> subtract -> reduce.
    mean = jnp.mean(y, axis=-1, keepdims=True)
    mean_sq = jnp.mean(y * y, axis=-1, keepdims=True)
    var = mean_sq - mean * mean
    return (y - mean) * jax.lax.rsqrt(var + LN_EPS) * g + beta


def _make_fused_mlp_kernel(num_hidden, softmax):
    """Build a kernel body for a fixed (trace-time) layer count / head config.

    refs = (x_ref,
            [w, b, gamma, beta] * num_hidden,
            [w, b, gamma, beta]  if softmax,
            o_ref)
    """

    def kernel(*refs):
        x_ref = refs[0]
        o_ref = refs[-1]
        idx = 1
        h = x_ref[...]

        for _ in range(num_hidden):
            w_ref, b_ref, g_ref, beta_ref = refs[idx:idx + 4]
            idx += 4
            y = jnp.dot(h, w_ref[...], preferred_element_type=jnp.float32)
            y = y + b_ref[...]
            y = _layernorm(y, g_ref[...], beta_ref[...])
            h = jnp.maximum(y, 0.0)

        if softmax:
            w_ref, b_ref, g_ref, beta_ref = refs[idx:idx + 4]
            idx += 4
            y = jnp.dot(h, w_ref[...], preferred_element_type=jnp.float32)
            y = y + b_ref[...]
            y = _layernorm(y, g_ref[...], beta_ref[...])
            y = y - jnp.max(y, axis=-1, keepdims=True)
            e = jnp.exp(y)
            denom = jnp.sum(e, axis=-1, keepdims=True)
            h = e * pl.reciprocal(denom, approx=True)  # EUP slot, ~free

        o_ref[...] = h

    return kernel


def _fused_mlp_pallas(x2d, hidden_params, out_head, softmax):
    """Single pallas_call for the whole (already flattened) MLP."""
    args = [x2d]
    for p in hidden_params:
        args.extend(p)
    if softmax:
        args.extend(out_head)

    if softmax:
        d_last = out_head[0].shape[1]
    elif hidden_params:
        d_last = hidden_params[-1][0].shape[1]
    else:
        d_last = x2d.shape[1]

    kernel = _make_fused_mlp_kernel(len(hidden_params), softmax)
    vmem_spec = pl.BlockSpec(memory_space=pltpu.MemorySpace.VMEM)
    return pl.pallas_call(
        kernel,
        out_shape=jax.ShapeDtypeStruct((x2d.shape[0], d_last), jnp.float32),
        in_specs=[vmem_spec] * len(args),
        out_specs=vmem_spec,
    )(*args)


# ---------------------------------------------------------------------------
# VSA folding: Linear(d_in->d_vsa) per token, then flatten, then Linear
# (seq*d_vsa -> d_h)  ==  flatten, then Linear with
#   W1' = kron(I_seq, W_vsa) @ W1,   b1' = b1 + (tile(b_vsa, seq)) @ W1
# Computed blockwise (no kron materialized). Exact composition of two linears.
# ---------------------------------------------------------------------------
def _fold_vsa_into_first_hidden(vsa_params, first_hidden, seq, d_in, d_vsa):
    w_vsa, b_vsa = vsa_params                 # (d_in, d_vsa), (1, d_vsa)
    w1, b1, g1, beta1 = first_hidden          # w1: (seq*d_vsa, d_h)
    d_h = w1.shape[1]
    w1_3 = w1.reshape(seq, d_vsa, d_h)
    w_eff = jnp.einsum(
        "iv,svo->sio", w_vsa, w1_3, precision=jax.lax.Precision.HIGHEST
    ).reshape(seq * d_in, d_h)
    b_eff = b1 + jnp.matmul(
        b_vsa, jnp.sum(w1_3, axis=0), precision=jax.lax.Precision.HIGHEST
    )
    return (w_eff, b_eff, g1, beta1)


# ---------------------------------------------------------------------------
# Parameters (deterministic, PyTorch-style uniform(-1/sqrt(fan_in), +1/sqrt(fan_in)))
# ---------------------------------------------------------------------------
def _init_linear(key, fan_in, fan_out):
    kw, kb = jax.random.split(key)
    bound = 1.0 / float(fan_in) ** 0.5
    w = jax.random.uniform(kw, (fan_in, fan_out), jnp.float32, -bound, bound)
    b = jax.random.uniform(kb, (1, fan_out), jnp.float32, -bound, bound)
    return w, b


def init_mlp_params(key, d_in, d_out, d_vsa, seq, hidden_layers=3, softmax=False):
    # LazyLinear input sizes are resolved statically here assuming a 3-D input
    # (batch, seq, d_in): first hidden layer sees seq * d_vsa (or seq * d_in)
    # features after the flatten in forward().
    # TODO(synk): params initialised this way only support inputs with ndim > 2
    # (a 2-D input would need first fan_in = d_in, like LazyLinear would infer).
    keys = jax.random.split(key, hidden_layers + 2)
    params = {}
    if d_in != d_vsa:
        params["vsa"] = _init_linear(keys[0], d_in, d_vsa)
        fan_in = seq * d_vsa
    else:
        fan_in = seq * d_in
    hidden = []
    for i in range(hidden_layers):
        w, b = _init_linear(keys[1 + i], fan_in, d_vsa)
        g = jnp.ones((1, d_vsa), jnp.float32)
        be = jnp.zeros((1, d_vsa), jnp.float32)
        hidden.append((w, b, g, be))
        fan_in = d_vsa
    params["hidden"] = hidden
    if softmax:
        w, b = _init_linear(keys[-1], d_vsa, d_out)
        params["out"] = (w, b, jnp.ones((1, d_out), jnp.float32),
                         jnp.zeros((1, d_out), jnp.float32))
    return params


# ---------------------------------------------------------------------------
# Forward pass (single fused Pallas call) and pure-JAX reference
# ---------------------------------------------------------------------------
def mlp_forward_pallas(params, x, d_in, d_vsa, softmax=False):
    hidden = list(params["hidden"])
    if x.ndim > 2:
        if d_in != d_vsa:
            tokens = 1
            for s in x.shape[1:-1]:
                tokens *= s
            hidden[0] = _fold_vsa_into_first_hidden(
                params["vsa"], hidden[0], tokens, d_in, d_vsa)
        x = x.reshape(x.shape[0], -1)
    out_head = params["out"] if softmax else None
    return _fused_mlp_pallas(x, hidden, out_head, softmax)


def mlp_forward_reference(params, x, d_in, d_vsa, softmax=False):
    hi = jax.lax.Precision.HIGHEST

    def ln(y, g, beta):
        m = y.mean(-1, keepdims=True)
        v = ((y - m) ** 2).mean(-1, keepdims=True)
        return (y - m) / jnp.sqrt(v + LN_EPS) * g + beta

    if x.ndim > 2:
        if d_in != d_vsa:
            w, b = params["vsa"]
            x = jnp.matmul(x, w, precision=hi) + b
        x = x.reshape(x.shape[0], -1)
    for (w, b, g, beta) in params["hidden"]:
        x = jnp.maximum(ln(jnp.matmul(x, w, precision=hi) + b, g, beta), 0.0)
    if softmax:
        w, b, g, beta = params["out"]
        x = jax.nn.softmax(ln(jnp.matmul(x, w, precision=hi) + b, g, beta), axis=-1)
    return x


# ---------------------------------------------------------------------------
if __name__ == "__main__":
    key = jax.random.PRNGKey(0)
    k_x, k_p = jax.random.split(key)

    # Small but TPU-friendly shapes: batch fills the 8 f32 sublanes, d_vsa=128
    # is lane-dense, and the 3-D input exercises the learnable_vsa + flatten
    # path (d_in != d_vsa).
    B, S, d_in, d_vsa, d_out, hidden_layers = 8, 8, 16, 128, 8, 3
    x = jax.random.normal(k_x, (B, S, d_in), jnp.float32)

    # Default configuration: softmax=False -> output is (B, d_vsa)
    params = init_mlp_params(k_p, d_in, d_out, d_vsa, S,
                             hidden_layers=hidden_layers, softmax=False)
    out = jax.block_until_ready(
        mlp_forward_pallas(params, x, d_in, d_vsa, softmax=False))
    ref = mlp_forward_reference(params, x, d_in, d_vsa, softmax=False)
    assert out.shape == (B, d_vsa), out.shape
    assert jnp.allclose(out, ref, atol=1e-3, rtol=1e-3)

    # Softmax head: output is (B, d_out)
    params_sm = init_mlp_params(k_p, d_in, d_out, d_vsa, S,
                                hidden_layers=hidden_layers, softmax=True)
    out_sm = jax.block_until_ready(
        mlp_forward_pallas(params_sm, x, d_in, d_vsa, softmax=True))
    ref_sm = mlp_forward_reference(params_sm, x, d_in, d_vsa, softmax=True)
    assert out_sm.shape == (B, d_out), out_sm.shape
    assert jnp.allclose(out_sm, ref_sm, atol=1e-3, rtol=1e-3)

    print("KERNEL_OK")
</pallas_src>

<mosaic_0001>
module attributes {stable_mosaic.version = 11 : i64} {
  func.func @kernel(%arg0: memref<8x128xf32, #tpu.memory_space<vmem>>, %arg1: memref<128x128xf32, #tpu.memory_space<vmem>>, %arg2: memref<1x128xf32, #tpu.memory_space<vmem>>, %arg3: memref<1x128xf32, #tpu.memory_space<vmem>>, %arg4: memref<1x128xf32, #tpu.memory_space<vmem>>, %arg5: memref<128x128xf32, #tpu.memory_space<vmem>>, %arg6: memref<1x128xf32, #tpu.memory_space<vmem>>, %arg7: memref<1x128xf32, #tpu.memory_space<vmem>>, %arg8: memref<1x128xf32, #tpu.memory_space<vmem>>, %arg9: memref<128x128xf32, #tpu.memory_space<vmem>>, %arg10: memref<1x128xf32, #tpu.memory_space<vmem>>, %arg11: memref<1x128xf32, #tpu.memory_space<vmem>>, %arg12: memref<1x128xf32, #tpu.memory_space<vmem>>, %arg13: memref<8x128xf32, #tpu.memory_space<vmem>>) attributes {dimension_semantics = [], scalar_prefetch = 0 : i64, scratch_operands = 0 : i64, tpu.core_type = #tpu.core_type<tc>} {
    %c0 = arith.constant 0 : index
    %c0_0 = arith.constant 0 : index
    %0 = vector.load %arg0[%c0, %c0_0] : memref<8x128xf32, #tpu.memory_space<vmem>>, vector<8x128xf32>
    %c0_1 = arith.constant 0 : index
    %c0_2 = arith.constant 0 : index
    %1 = vector.load %arg1[%c0_1, %c0_2] : memref<128x128xf32, #tpu.memory_space<vmem>>, vector<128x128xf32>
    %cst = arith.constant dense<0.000000e+00> : vector<8x128xf32>
    %2 = tpu.matmul %0, %1, %cst {dimension_numbers = #tpu.dot_dimension_numbers<[1], [0], [0], [1], [0, 0, 1, 1], [], []>} : vector<8x128xf32>, vector<128x128xf32>, vector<8x128xf32> -> vector<8x128xf32>
    %c0_3 = arith.constant 0 : index
    %c0_4 = arith.constant 0 : index
    %3 = vector.load %arg2[%c0_3, %c0_4] : memref<1x128xf32, #tpu.memory_space<vmem>>, vector<1x128xf32>
    %4 = vector.broadcast %3 : vector<1x128xf32> to vector<8x128xf32>
    %5 = arith.addf %2, %4 : vector<8x128xf32>
    %c0_5 = arith.constant 0 : index
    %c0_6 = arith.constant 0 : index
    %6 = vector.load %arg3[%c0_5, %c0_6] : memref<1x128xf32, #tpu.memory_space<vmem>>, vector<1x128xf32>
    %c0_7 = arith.constant 0 : index
    %c0_8 = arith.constant 0 : index
    %7 = vector.load %arg4[%c0_7, %c0_8] : memref<1x128xf32, #tpu.memory_space<vmem>>, vector<1x128xf32>
    %cst_9 = arith.constant dense<0.000000e+00> : vector<8xf32>
    %8 = vector.multi_reduction <add>, %5, %cst_9 [1] : vector<8x128xf32> to vector<8xf32>
    %9 = vector.shape_cast %8 : vector<8xf32> to vector<8x1xf32>
    %cst_10 = arith.constant 1.280000e+02 : f32
    %10 = vector.broadcast %cst_10 : f32 to vector<8x1xf32>
    %11 = arith.divf %9, %10 : vector<8x1xf32>
    %12 = arith.mulf %5, %5 : vector<8x128xf32>
    %cst_11 = arith.constant dense<0.000000e+00> : vector<8xf32>
    %13 = vector.multi_reduction <add>, %12, %cst_11 [1] : vector<8x128xf32> to vector<8xf32>
    %14 = vector.shape_cast %13 : vector<8xf32> to vector<8x1xf32>
    %cst_12 = arith.constant 1.280000e+02 : f32
    %15 = vector.broadcast %cst_12 : f32 to vector<8x1xf32>
    %16 = arith.divf %14, %15 : vector<8x1xf32>
    %17 = arith.mulf %11, %11 : vector<8x1xf32>
    %18 = arith.subf %16, %17 : vector<8x1xf32>
    %19 = vector.broadcast %11 : vector<8x1xf32> to vector<8x128xf32>
    %20 = arith.subf %5, %19 : vector<8x128xf32>
    %cst_13 = arith.constant 9.99999974E-6 : f32
    %21 = vector.broadcast %cst_13 : f32 to vector<8x1xf32>
    %22 = arith.addf %18, %21 : vector<8x1xf32>
    %23 = math.rsqrt %22 : vector<8x1xf32>
    %24 = vector.broadcast %23 : vector<8x1xf32> to vector<8x128xf32>
    %25 = arith.mulf %20, %24 : vector<8x128xf32>
    %26 = vector.broadcast %6 : vector<1x128xf32> to vector<8x128xf32>
    %27 = arith.mulf %25, %26 : vector<8x128xf32>
    %28 = vector.broadcast %7 : vector<1x128xf32> to vector<8x128xf32>
    %29 = arith.addf %27, %28 : vector<8x128xf32>
    %cst_14 = arith.constant 0.000000e+00 : f32
    %30 = vector.broadcast %cst_14 : f32 to vector<8x128xf32>
    %31 = arith.maximumf %29, %30 : vector<8x128xf32>
    %c0_15 = arith.constant 0 : index
    %c0_16 = arith.constant 0 : index
    %32 = vector.load %arg5[%c0_15, %c0_16] : memref<128x128xf32, #tpu.memory_space<vmem>>, vector<128x128xf32>
    %cst_17 = arith.constant dense<0.000000e+00> : vector<8x128xf32>
    %33 = tpu.matmul %31, %32, %cst_17 {dimension_numbers = #tpu.dot_dimension_numbers<[1], [0], [0], [1], [0, 0, 1, 1], [], []>} : vector<8x128xf32>, vector<128x128xf32>, vector<8x128xf32> -> vector<8x128xf32>
    %c0_18 = arith.constant 0 : index
    %c0_19 = arith.constant 0 : index
    %34 = vector.load %arg6[%c0_18, %c0_19] : memref<1x128xf32, #tpu.memory_space<vmem>>, vector<1x128xf32>
    %35 = vector.broadcast %34 : vector<1x128xf32> to vector<8x128xf32>
    %36 = arith.addf %33, %35 : vector<8x128xf32>
    %c0_20 = arith.constant 0 : index
    %c0_21 = arith.constant 0 : index
    %37 = vector.load %arg7[%c0_20, %c0_21] : memref<1x128xf32, #tpu.memory_space<vmem>>, vector<1x128xf32>
    %c0_22 = arith.constant 0 : index
    %c0_23 = arith.constant 0 : index
    %38 = vector.load %arg8[%c0_22, %c0_23] : memref<1x128xf32, #tpu.memory_space<vmem>>, vector<1x128xf32>
    %cst_24 = arith.constant dense<0.000000e+00> : vector<8xf32>
    %39 = vector.multi_reduction <add>, %36, %cst_24 [1] : vector<8x128xf32> to vector<8xf32>
    %40 = vector.shape_cast %39 : vector<8xf32> to vector<8x1xf32>
    %cst_25 = arith.constant 1.280000e+02 : f32
    %41 = vector.broadcast %cst_25 : f32 to vector<8x1xf32>
    %42 = arith.divf %40, %41 : vector<8x1xf32>
    %43 = arith.mulf %36, %36 : vector<8x128xf32>
    %cst_26 = arith.constant dense<0.000000e+00> : vector<8xf32>
    %44 = vector.multi_reduction <add>, %43, %cst_26 [1] : vector<8x128xf32> to vector<8xf32>
    %45 = vector.shape_cast %44 : vector<8xf32> to vector<8x1xf32>
    %cst_27 = arith.constant 1.280000e+02 : f32
    %46 = vector.broadcast %cst_27 : f32 to vector<8x1xf32>
    %47 = arith.divf %45, %46 : vector<8x1xf32>
    %48 = arith.mulf %42, %42 : vector<8x1xf32>
    %49 = arith.subf %47, %48 : vector<8x1xf32>
    %50 = vector.broadcast %42 : vector<8x1xf32> to vector<8x128xf32>
    %51 = arith.subf %36, %50 : vector<8x128xf32>
    %cst_28 = arith.constant 9.99999974E-6 : f32
    %52 = vector.broadcast %cst_28 : f32 to vector<8x1xf32>
    %53 = arith.addf %49, %52 : vector<8x1xf32>
    %54 = math.rsqrt %53 : vector<8x1xf32>
    %55 = vector.broadcast %54 : vector<8x1xf32> to vector<8x128xf32>
    %56 = arith.mulf %51, %55 : vector<8x128xf32>
    %57 = vector.broadcast %37 : vector<1x128xf32> to vector<8x128xf32>
    %58 = arith.mulf %56, %57 : vector<8x128xf32>
    %59 = vector.broadcast %38 : vector<1x128xf32> to vector<8x128xf32>
    %60 = arith.addf %58, %59 : vector<8x128xf32>
    %cst_29 = arith.constant 0.000000e+00 : f32
    %61 = vector.broadcast %cst_29 : f32 to vector<8x128xf32>
    %62 = arith.maximumf %60, %61 : vector<8x128xf32>
    %c0_30 = arith.constant 0 : index
    %c0_31 = arith.constant 0 : index
    %63 = vector.load %arg9[%c0_30, %c0_31] : memref<128x128xf32, #tpu.memory_space<vmem>>, vector<128x128xf32>
    %cst_32 = arith.constant dense<0.000000e+00> : vector<8x128xf32>
    %64 = tpu.matmul %62, %63, %cst_32 {dimension_numbers = #tpu.dot_dimension_numbers<[1], [0], [0], [1], [0, 0, 1, 1], [], []>} : vector<8x128xf32>, vector<128x128xf32>, vector<8x128xf32> -> vector<8x128xf32>
    %c0_33 = arith.constant 0 : index
    %c0_34 = arith.constant 0 : index
    %65 = vector.load %arg10[%c0_33, %c0_34] : memref<1x128xf32, #tpu.memory_space<vmem>>, vector<1x128xf32>
    %66 = vector.broadcast %65 : vector<1x128xf32> to vector<8x128xf32>
    %67 = arith.addf %64, %66 : vector<8x128xf32>
    %c0_35 = arith.constant 0 : index
    %c0_36 = arith.constant 0 : index
    %68 = vector.load %arg11[%c0_35, %c0_36] : memref<1x128xf32, #tpu.memory_space<vmem>>, vector<1x128xf32>
    %c0_37 = arith.constant 0 : index
    %c0_38 = arith.constant 0 : index
    %69 = vector.load %arg12[%c0_37, %c0_38] : memref<1x128xf32, #tpu.memory_space<vmem>>, vector<1x128xf32>
    %cst_39 = arith.constant dense<0.000000e+00> : vector<8xf32>
    %70 = vector.multi_reduction <add>, %67, %cst_39 [1] : vector<8x128xf32> to vector<8xf32>
    %71 = vector.shape_cast %70 : vector<8xf32> to vector<8x1xf32>
    %cst_40 = arith.constant 1.280000e+02 : f32
    %72 = vector.broadcast %cst_40 : f32 to vector<8x1xf32>
    %73 = arith.divf %71, %72 : vector<8x1xf32>
    %74 = arith.mulf %67, %67 : vector<8x128xf32>
    %cst_41 = arith.constant dense<0.000000e+00> : vector<8xf32>
    %75 = vector.multi_reduction <add>, %74, %cst_41 [1] : vector<8x128xf32> to vector<8xf32>
    %76 = vector.shape_cast %75 : vector<8xf32> to vector<8x1xf32>
    %cst_42 = arith.constant 1.280000e+02 : f32
    %77 = vector.broadcast %cst_42 : f32 to vector<8x1xf32>
    %78 = arith.divf %76, %77 : vector<8x1xf32>
    %79 = arith.mulf %73, %73 : vector<8x1xf32>
    %80 = arith.subf %78, %79 : vector<8x1xf32>
    %81 = vector.broadcast %73 : vector<8x1xf32> to vector<8x128xf32>
    %82 = arith.subf %67, %81 : vector<8x128xf32>
    %cst_43 = arith.constant 9.99999974E-6 : f32
    %83 = vector.broadcast %cst_43 : f32 to vector<8x1xf32>
    %84 = arith.addf %80, %83 : vector<8x1xf32>
    %85 = math.rsqrt %84 : vector<8x1xf32>
    %86 = vector.broadcast %85 : vector<8x1xf32> to vector<8x128xf32>
    %87 = arith.mulf %82, %86 : vector<8x128xf32>
    %88 = vector.broadcast %68 : vector<1x128xf32> to vector<8x128xf32>
    %89 = arith.mulf %87, %88 : vector<8x128xf32>
    %90 = vector.broadcast %69 : vector<1x128xf32> to vector<8x128xf32>
    %91 = arith.addf %89, %90 : vector<8x128xf32>
    %cst_44 = arith.constant 0.000000e+00 : f32
    %92 = vector.broadcast %cst_44 : f32 to vector<8x128xf32>
    %93 = arith.maximumf %91, %92 : vector<8x128xf32>
    %c0_45 = arith.constant 0 : index
    %c0_46 = arith.constant 0 : index
    %94 = vector.load %arg13[%c0_45, %c0_46] : memref<8x128xf32, #tpu.memory_space<vmem>>, vector<8x128xf32>
    tpu.vector_store %arg13[%c0_45, %c0_46], %93 {strides = array<i32>} : memref<8x128xf32, #tpu.memory_space<vmem>>, vector<8x128xf32>,
    return
  }
}

</mosaic_0001>

<bundles_post_ra>
// kernel: tpu_custom_call.1
= control target key start
LH: loop header
LB: loop body
LE: loop exit
PB: predicated region body
PF: predicated region fallthrough
CT: control target
= control target key end

     0   :  { %18 = vsyncpa [#allocation3], 0  ;;  %s1061_s0 = inlined_call_operand.hbm [shape: f32[8,128], index: 0, kind: input, shape index: {}]   ;;  %s1062_s1 = inlined_call_operand.hbm [shape: f32[128,128], index: 1, kind: input, shape index: {}]   ;;  %s1063_s2 = inlined_call_operand.vmem [shape: f32[1,128], index: 2, kind: input, shape index: {}]   ;;  %s1064_s3 = inlined_call_operand.vmem [shape: f32[1,128], index: 3, kind: input, shape index: {}]   ;;  %s1065_s4 = inlined_call_operand.vmem [shape: f32[1,128], index: 4, kind: input, shape index: {}]   ;;  %s1066_s5 = inlined_call_operand.hbm [shape: f32[128,128], index: 5, kind: input, shape index: {}]   ;;  %s1067_s6 = inlined_call_operand.vmem [shape: f32[1,128], index: 6, kind: input, shape index: {}]   ;;  %s1068_s7 = inlined_call_operand.vmem [shape: f32[1,128], index: 7, kind: input, shape index: {}]   ;;  %s1069_s8 = inlined_call_operand.vmem [shape: f32[1,128], index: 8, kind: input, shape index: {}]   ;;  %s1070_s9 = inlined_call_operand.hbm [shape: f32[128,128], index: 9, kind: input, shape index: {}]   ;;  %s1071_s10 = inlined_call_operand.vmem [shape: f32[1,128], index: 10, kind: input, shape index: {}]   ;;  %s1072_s11 = inlined_call_operand.vmem [shape: f32[1,128], index: 11, kind: input, shape index: {}]   ;;  %s1073_s12 = inlined_call_operand.vmem [shape: f32[1,128], index: 12, kind: input, shape index: {}]   ;;  %s1074_s13 = inlined_call_operand.hbm [shape: f32[8,128], index: 13, kind: output, shape index: {}]  }
   0x1   :  { %19 = vsyncpa [#allocation6], 0 }
   0x2   :  { %20 = vsyncpa [#allocation9], 0 }
   0x3   :  { %21 = vsyncpa [#allocation4], 0  ;;  %s858_s25 = smov [#allocation5]   ;;  %s740_s29 = scalar_lea.hbm %s1062_s1, 2048 }
   0x4   :  { %s37_s26 = sshll.u32 %s858_s25, 4  ;;  %p741_p0 = scmp.ne.s32.totalorder %s1062_s1, %s740_s29  ;;  %s38_s26 = int_to_ptr.vmem [resolvable:$true] %s37_s26 }
   0x5   :  { %p744_p1 = scmp.lt.u32.totalorder %s740_s29, %s1062_s1 }
   0x7   :  { %p746_p2 = pnand %p744_p1, %p741_p0 }
   0x9   :  { %749 = shalt.err (!%p746_p2)
}
   0xa   :  { %s750_s17 = scalar_lea.vmem %s38_s26, 2048  ;;  %p755_p4 = scmp.lt.s32.totalorder %s38_s26, %s38_s26 }
   0xb   :  { %p751_p3 = scmp.ne.s32.totalorder %s38_s26, %s750_s17  ;;  %p756_p5 = scmp.lt.s32.totalorder %s750_s17, %s750_s17 }
   0xd   :  { %p757_p6 = por %p756_p5, %p755_p4 }
   0xf   :  { %p758_p7 = pnand %p757_p6, %p751_p3 }
  0x11   :  { %761 = shalt.err (!%p758_p7)
}
  0x12   :  { %s859_s18 = smov 128   ;;  %s860_s19 = smov 8  }
  0x13   :  { %43 = dma.hbm_to_vmem [thread:$0]  %s1062_s1, 2048, %s38_s26, [#allocation6], %s859_s18, %s859_s18, %s860_s19  }
  0x14   :  { %s861_s22 = smov [#allocation2]   ;;  %s862_s24 = smov [#allocation7]  }
  0x15   :  { %s28_s23 = sshll.u32 %s861_s22, 4  ;;  %s55_s25 = sshll.u32 %s862_s24, 4  ;;  %s29_s23 = int_to_ptr.vmem [resolvable:$true] %s28_s23  ;;  %s56_s25 = int_to_ptr.vmem [resolvable:$true] %s55_s25 }
  0x16   :  { %s762_s29 = scalar_lea.hbm %s1061_s0, 128 }
  0x17   :  { %p763_p8 = scmp.ne.s32.totalorder %s1061_s0, %s762_s29  ;;  %p766_p9 = scmp.lt.u32.totalorder %s762_s29, %s1061_s0 }
  0x19   :  { %p768_p10 = pnand %p766_p9, %p763_p8 }
  0x1b   :  { %771 = shalt.err (!%p768_p10)
}
  0x1c   :  { %s772_s1 = scalar_lea.vmem %s29_s23, 128  ;;  %p777_p12 = scmp.lt.s32.totalorder %s29_s23, %s29_s23 }
  0x1d   :  { %p773_p11 = scmp.ne.s32.totalorder %s29_s23, %s772_s1  ;;  %p778_p13 = scmp.lt.s32.totalorder %s772_s1, %s772_s1 }
  0x1f   :  { %p779_p0 = por %p778_p13, %p777_p12 }
  0x21   :  { %p780_p1 = pnand %p779_p0, %p773_p11 }
  0x23   :  { %783 = shalt.err (!%p780_p1)
}
  0x24   :  { %31 = dma.hbm_to_vmem [thread:$0]  %s1061_s0, 128, %s29_s23, [#allocation3]  }
  0x25   :  { %s784_s22 = scalar_lea.hbm %s1066_s5, 2048 }
  0x26   :  { %p785_p2 = scmp.ne.s32.totalorder %s1066_s5, %s784_s22  ;;  %p788_p3 = scmp.lt.u32.totalorder %s784_s22, %s1066_s5 }
  0x28   :  { %p790_p4 = pnand %p788_p3, %p785_p2 }
  0x2a   :  { %793 = shalt.err (!%p790_p4)
}
  0x2b   :  { %s794_s30 = scalar_lea.vmem %s56_s25, 2048  ;;  %p799_p6 = scmp.lt.s32.totalorder %s56_s25, %s56_s25 }
  0x2c   :  { %p795_p5 = scmp.ne.s32.totalorder %s56_s25, %s794_s30  ;;  %p800_p7 = scmp.lt.s32.totalorder %s794_s30, %s794_s30 }
  0x2e   :  { %p801_p8 = por %p800_p7, %p799_p6 }
  0x30   :  { %p802_p9 = pnand %p801_p8, %p795_p5 }
  0x32   :  { %805 = shalt.err (!%p802_p9)
}
  0x33   :  { %61 = dma.hbm_to_vmem [thread:$0]  %s1066_s5, 2048, %s56_s25, [#allocation6], %s859_s18, %s859_s18, %s860_s19  }
  0x34   :  { %s863_s14 = smov [#allocation8]   ;;  %s806_s26 = scalar_lea.hbm %s1070_s9, 2048 }
  0x35   :  { %s73_s15 = sshll.u32 %s863_s14, 4  ;;  %p807_p10 = scmp.ne.s32.totalorder %s1070_s9, %s806_s26  ;;  %s74_s15 = int_to_ptr.vmem [resolvable:$true] %s73_s15 }
  0x36   :  { %p810_p11 = scmp.lt.u32.totalorder %s806_s26, %s1070_s9 }
  0x38   :  { %p812_p12 = pnand %p810_p11, %p807_p10 }
  0x3a   :  { %815 = shalt.err (!%p812_p12)
}
  0x3b   :  { %s816_s24 = scalar_lea.vmem %s74_s15, 2048  ;;  %p821_p0 = scmp.lt.s32.totalorder %s74_s15, %s74_s15 }
  0x3c   :  { %p817_p13 = scmp.ne.s32.totalorder %s74_s15, %s816_s24  ;;  %p822_p1 = scmp.lt.s32.totalorder %s816_s24, %s816_s24 }
  0x3e   :  { %p823_p2 = por %p822_p1, %p821_p0 }
  0x40   :  { %p824_p3 = pnand %p823_p2, %p817_p13 }
  0x42   :  { %827 = shalt.err (!%p824_p3)
}
  0x43   :  { %79 = dma.hbm_to_vmem [thread:$0]  %s1070_s9, 2048, %s74_s15, [#allocation9], %s859_s18, %s859_s18, %s860_s19  }
  0x44   :  { %850 = dma.done.wait [#allocation3], 128  }
  0x45   :  { %851 = vsyncadd [#allocation3], 4294967168 }
  0x46   :  { %852 = dma.done.wait [#allocation6], 4096  }
  0x47   :  { %853 = vsyncadd [#allocation6], 4294963200 }
  0x48   :  { %854 = dma.done.wait [#allocation9], 2048  }
  0x49   :  { %855 = vsyncadd [#allocation9], 4294965248  ;;  %v864_v0 = vmov 0.0|0.0   ;;  %vm865_vm0 = vmmov 0   ;;  %v866_v1 = vmov 0.0   ;;  %v99_v2 = vld [vmem:[#allocation5] sm:$0xff] }
  0x4a   :  { %652 = vmatprep.subr.bf16.mxu0 %v864_v0  ;;  %579 = vmatprep.mubr.msk.f32.mxu0 %vm865_vm0, %v866_v1  ;;  %v100_v3 = vld [vmem:[#allocation5 + $0x8] sm:$0xff]  ;;  %v101_v4 = vld [vmem:[#allocation5 + $0x10] sm:$0xff]  ;;  %v102_v6 = vld [vmem:[#allocation5 + $0x18] sm:$0xff]  ;;  %s867_s16 = smov [#allocation10]  }
  0x4b   :  { %676 = vmatprep.subr.bf16.mxu1 %v864_v0  ;;  %614 = vmatprep.mubr.msk.f32.mxu1 %vm865_vm0, %v866_v1  ;;  %v653_v5 = vpack.c.bf16 %v100_v3, %v99_v2  ;;  %v656_v7 = vpack.c.bf16 %v102_v6, %v101_v4  ;;  %v103_v8 = vld [vmem:[#allocation5 + $0x20] sm:$0xff]  ;;  %v104_v9 = vld [vmem:[#allocation5 + $0x28] sm:$0xff]  ;;  %v105_v11 = vld [vmem:[#allocation5 + $0x30] sm:$0xff]  ;;  %s476_s1 = sshll.u32 %s867_s16, 4  ;;  %s477_s1 = int_to_ptr.vmem [resolvable:$true] %s476_s1 }
  0x4c   :  { %v659_v10 = vpack.c.bf16 %v104_v9, %v103_v8  ;;  %v106_v12 = vld [vmem:[#allocation5 + $0x38] sm:$0xff]  ;;  %v107_v14 = vld [vmem:[#allocation5 + $0x40] sm:$0xff]  ;;  %v108_v15 = vld [vmem:[#allocation5 + $0x48] sm:$0xff]  ;;  %s828_s26 = scalar_lea.vmem %s477_s1, 128  ;;  %p833_p5 = scmp.lt.s32.totalorder %s477_s1, %s477_s1 }
  0x4d   :  { %654 = vmatpush3.bf16.msra.mxu0 %v653_v5  ;;  %v662_v13 = vpack.c.bf16 %v106_v12, %v105_v11  ;;  %v665_v16 = vpack.c.bf16 %v108_v15, %v107_v14  ;;  %v109_v17 = vld [vmem:[#allocation5 + $0x50] sm:$0xff]  ;;  %v110_v18 = vld [vmem:[#allocation5 + $0x58] sm:$0xff]  ;;  %v111_v20 = vld [vmem:[#allocation5 + $0x60] sm:$0xff]  ;;  %p829_p4 = scmp.ne.s32.totalorder %s477_s1, %s828_s26  ;;  %p834_p6 = scmp.lt.s32.totalorder %s828_s26, %s828_s26 }
  0x4e   :  { %655 = vmatprep.subr.bf16.mxu0 %v864_v0  ;;  %v668_v19 = vpack.c.bf16 %v110_v18, %v109_v17  ;;  %v112_v21 = vld [vmem:[#allocation5 + $0x68] sm:$0xff]  ;;  %v113_v23 = vld [vmem:[#allocation5 + $0x70] sm:$0xff]  ;;  %v114_v24 = vld [vmem:[#allocation5 + $0x78] sm:$0xff] }
  0x4f   :  { %v671_v22 = vpack.c.bf16 %v112_v21, %v111_v20  ;;  %v674_v25 = vpack.c.bf16 %v114_v24, %v113_v23  ;;  %v98_v26 = vld [vmem:[#allocation2] sm:$0xff]  ;;  %v223_v27 = vld [vmem:[#allocation7] sm:$0xff]  ;;  %v224_v28 = vld [vmem:[#allocation7 + $0x8] sm:$0xff]  ;;  %p835_p7 = por %p834_p6, %p833_p5 }
  0x50   :  { %v677_v29 = vpack.c.bf16 %v224_v28, %v223_v27  ;;  %v487_v30 = vld [vmem:[%s1063_s2] ss:$0 sm:$0xff]  ;;  %v225_v35 = vld [vmem:[#allocation7 + $0x10] sm:$0xff]  ;;  %v227_v38 = vld [vmem:[#allocation7 + $0x20] sm:$0xff] }
  0x51   :  { %657 = vmatpush3.bf16.msra.mxu0 %v656_v7  ;;  %v226_v36 = vld [vmem:[#allocation7 + $0x18] sm:$0xff]  ;;  %v228_v39 = vld [vmem:[#allocation7 + $0x28] sm:$0xff]  ;;  %v229_v41 = vld [vmem:[#allocation7 + $0x30] sm:$0xff]  ;;  %p836_p8 = pnand %p835_p7, %p829_p4 }
  0x52   :  { %658 = vmatprep.subr.bf16.mxu0 %v864_v0  ;;  %678 = vmatpush3.bf16.msra.mxu1 %v677_v29  ;;  %v680_v37 = vpack.c.bf16 %v226_v36, %v225_v35  ;;  %v683_v40 = vpack.c.bf16 %v228_v39, %v227_v38  ;;  %v230_v42 = vld [vmem:[#allocation7 + $0x38] sm:$0xff]  ;;  %v231_v44 = vld [vmem:[#allocation7 + $0x40] sm:$0xff]  ;;  %v232_v45 = vld [vmem:[#allocation7 + $0x48] sm:$0xff] }
  0x53   :  { %679 = vmatprep.subr.bf16.mxu1 %v864_v0  ;;  %v686_v43 = vpack.c.bf16 %v230_v42, %v229_v41  ;;  %v689_v46 = vpack.c.bf16 %v232_v45, %v231_v44  ;;  %v233_v47 = vld [vmem:[#allocation7 + $0x50] sm:$0xff]  ;;  %v234_v48 = vld [vmem:[#allocation7 + $0x58] sm:$0xff]  ;;  %v235_v50 = vld [vmem:[#allocation7 + $0x60] sm:$0xff] }
  0x54   :  { %v692_v49 = vpack.c.bf16 %v234_v48, %v233_v47  ;;  %v236_v51 = vld [vmem:[#allocation7 + $0x68] sm:$0xff]  ;;  %v237_v53 = vld [vmem:[#allocation7 + $0x70] sm:$0xff]  ;;  %v238_v54 = vld [vmem:[#allocation7 + $0x78] sm:$0xff] }
  0x55   :  { %660 = vmatpush3.bf16.msra.mxu0 %v659_v10  ;;  %v695_v52 = vpack.c.bf16 %v236_v51, %v235_v50  ;;  %v698_v55 = vpack.c.bf16 %v238_v54, %v237_v53  ;;  %v488_v2 = vld [vmem:[%s1064_s3] ss:$0 sm:$0xff]  ;;  %v346_v8 = vld [vmem:[#allocation8] sm:$0xff]  ;;  %v347_v9 = vld [vmem:[#allocation8 + $0x8] sm:$0xff] }
  0x56   :  { %661 = vmatprep.subr.bf16.mxu0 %v864_v0  ;;  %681 = vmatpush3.bf16.msra.mxu1 %v680_v37  ;;  %v489_v4 = vld [vmem:[%s1065_s4] ss:$0 sm:$0xff]  ;;  %v701_v10 = vpack.c.bf16 %v347_v9, %v346_v8  ;;  %v351_v20 = vld [vmem:[#allocation8 + $0x28] sm:$0xff]  ;;  %v356_v28 = vld [vmem:[#allocation8 + $0x50] sm:$0xff] }
  0x57   :  { %682 = vmatprep.subr.bf16.mxu1 %v864_v0  ;;  %v490_v11 = vld [vmem:[%s1067_s6] ss:$0 sm:$0xff] }
  0x58   :  { %v349_v17 = vld [vmem:[#allocation8 + $0x18] sm:$0xff] }
  0x59   :  { %663 = vmatpush3.bf16.msra.mxu0 %v662_v13  ;;  %v353_v23 = vld [vmem:[#allocation8 + $0x38] sm:$0xff] }
  0x5a   :  { %664 = vmatprep.subr.bf16.mxu0 %v864_v0  ;;  %684 = vmatpush3.bf16.msra.mxu1 %v683_v40  ;;  %v357_v29 = vld [vmem:[#allocation8 + $0x58] sm:$0xff] }
  0x5b   :  { %685 = vmatprep.subr.bf16.mxu1 %v864_v0  ;;  %v361_v35 = vld [vmem:[#allocation8 + $0x78] sm:$0xff] }
  0x5c   :  { %v493_v51 = vld [vmem:[%s1071_s10] ss:$0 sm:$0xff] }
  0x5d   :  { %666 = vmatpush3.bf16.msra.mxu0 %v665_v16  ;;  %v348_v16 = vld [vmem:[#allocation8 + $0x10] sm:$0xff] }
  0x5e   :  { %667 = vmatprep.subr.bf16.mxu0 %v864_v0  ;;  %687 = vmatpush3.bf16.msra.mxu1 %v686_v43  ;;  %v704_v18 = vpack.c.bf16 %v349_v17, %v348_v16 }
  0x5f   :  { %688 = vmatprep.subr.bf16.mxu1 %v864_v0 }
  0x61   :  { %669 = vmatpush3.bf16.msra.mxu0 %v668_v19  ;;  %v350_v19 = vld [vmem:[#allocation8 + $0x20] sm:$0xff] }
  0x62   :  { %670 = vmatprep.subr.bf16.mxu0 %v864_v0  ;;  %690 = vmatpush3.bf16.msra.mxu1 %v689_v46  ;;  %v707_v21 = vpack.c.bf16 %v351_v20, %v350_v19  ;;  %v491_v46 = vld [vmem:[%s1068_s7] ss:$0 sm:$0xff] }
  0x63   :  { %691 = vmatprep.subr.bf16.mxu1 %v864_v0 }
  0x65   :  { %672 = vmatpush3.bf16.msra.mxu0 %v671_v22  ;;  %v352_v22 = vld [vmem:[#allocation8 + $0x30] sm:$0xff] }
  0x66   :  { %673 = vmatprep.subr.bf16.mxu0 %v864_v0  ;;  %693 = vmatpush3.bf16.msra.mxu1 %v692_v49  ;;  %v710_v24 = vpack.c.bf16 %v353_v23, %v352_v22 }
  0x67   :  { %694 = vmatprep.subr.bf16.mxu1 %v864_v0 }
  0x69   :  { %675 = vmatpush3.bf16.msra.mxu0 %v674_v25  ;;  %v354_v25 = vld [vmem:[#allocation8 + $0x40] sm:$0xff] }
  0x6a   :  { %700 = vmatprep.subr.bf16.mxu0 %v864_v0  ;;  %696 = vmatpush3.bf16.msra.mxu1 %v695_v52 }
  0x6b   :  { %697 = vmatprep.subr.bf16.mxu1 %v864_v0 }
  0x6c   :  { %580 = vmatmul.mubr.f32.vlgmr.msra.gmra.mrb[0].mxu0 %v98_v26  ;;  %v355_v26 = vld [vmem:[#allocation8 + $0x48] sm:$0xff] }
  0x6d   :  { %649 = vmatprep.mubr.msk.f32.mxu0 %vm865_vm0, %v866_v1  ;;  %702 = vmatpush3.bf16.msra.mxu0 %v701_v10  ;;  %v713_v27 = vpack.c.bf16 %v355_v26, %v354_v25 }
  0x6e   :  { %699 = vmatpush3.bf16.msra.mxu1 %v698_v55  ;;  %703 = vmatprep.subr.bf16.mxu0 %v864_v0 }
  0x71   :  { %705 = vmatpush3.bf16.msra.mxu0 %v704_v18 }
  0x72   :  { %706 = vmatprep.subr.bf16.mxu0 %v864_v0 }
  0x75   :  { %708 = vmatpush3.bf16.msra.mxu0 %v707_v21 }
  0x76   :  { %709 = vmatprep.subr.bf16.mxu0 %v864_v0 }
  0x79   :  { %711 = vmatpush3.bf16.msra.mxu0 %v710_v24 }
  0x7a   :  { %712 = vmatprep.subr.bf16.mxu0 %v864_v0 }
  0x7d   :  { %714 = vmatpush3.bf16.msra.mxu0 %v713_v27 }
  0x7e   :  { %715 = vmatprep.subr.bf16.mxu0 %v864_v0 }
 0x13f   :  { %v188_v31 = vpop.f32.mrb[0].mxu0 }
 0x140   :  { %v189_v32 = vadd.f32 %v487_v30, %v188_v31  ;;  %v581_v33 = vpop.f32.mrb[1].mxu0  ;;  %v716_v30 = vpack.c.bf16 %v357_v29, %v356_v28  ;;  %v358_v31 = vld [vmem:[#allocation8 + $0x60] sm:$0xff] }
 0x142   :  { %194 = vadd.xlane.f32.xlu0 %v189_v32  ;;  %v198_v34 = vmul.f32 %v189_v32, %v189_v32  ;;  %717 = vmatpush3.bf16.msra.mxu0 %v716_v30 }
 0x143   :  { %718 = vmatprep.subr.bf16.mxu0 %v864_v0 }
 0x146   :  { %199 = vadd.xlane.f32.xlu0 %v198_v34  ;;  %v360_v34 = vld [vmem:[#allocation8 + $0x70] sm:$0xff] }
 0x147   :  { %v722_v36 = vpack.c.bf16 %v361_v35, %v360_v34 }
 0x1cf   :  { %v195_v56 = vpop.xlane.xlu0 %194 }
 0x1d0   :  { %v197_v57 = vmul.f32 0.0078125, %v195_v56 }
 0x1d2   :  { %v202_v59 = vmul.f32 %v197_v57, %v197_v57  ;;  %v204_v63 = vsub.f32 %v189_v32, %v197_v57  ;;  %v359_v32 = vld [vmem:[#allocation8 + $0x68] sm:$0xff] }
 0x1d3   :  { %v200_v58 = vpop.xlane.xlu0 %199  ;;  %v719_v33 = vpack.c.bf16 %v359_v32, %v358_v31 }
 0x1d4   :  { %v201_v60 = vmul.f32 0.0078125, %v200_v58 }
 0x1d5   :  { %720 = vmatpush3.bf16.msra.mxu0 %v719_v33 }
 0x1d6   :  { %v203_v61 = vsub.f32 %v201_v60, %v202_v59  ;;  %721 = vmatprep.subr.bf16.mxu0 %v864_v0  ;;  %v492_v0 = vld [vmem:[%s1069_s8] ss:$0 sm:$0xff] }
 0x1d8   :  { %v205_v62 = vadd.f32 1e-05, %v203_v61 }
 0x1d9   :  { %723 = vmatpush3.bf16.msra.mxu0 %v722_v36 }
 0x1da   :  { %734 = vrsqrt.f32 %v205_v62 }
 0x1e4   :  { %v735_v1 = vpop.eup %734 }
 0x1e5   :  { %v207_v3 = vmul.f32 %v735_v1, %v204_v63 }
 0x1e7   :  { %v214_v5 = vmul.f32 %v488_v2, %v207_v3  ;;  %v494_v2 = vld [vmem:[%s1072_s11] ss:$0 sm:$0xff] }
 0x1e9   :  { %v221_v6 = vadd.f32 %v489_v4, %v214_v5  ;;  %v495_v4 = vld [vmem:[%s1073_s12] ss:$0 sm:$0xff] }
 0x1eb   :  { %v222_v7 = vmax.f32 %v221_v6, 0.0 }
 0x1ed   :  { %615 = vmatmul.mubr.f32.vlgmr.msra.gmra.mrb[0].mxu1 %v222_v7 }
 0x2c0   :  { %v312_v12 = vpop.f32.mrb[0].mxu1 }
 0x2c1   :  { %v313_v13 = vadd.f32 %v490_v11, %v312_v12  ;;  %v616_v14 = vpop.f32.mrb[1].mxu1 }
 0x2c3   :  { %318 = vadd.xlane.f32.xlu1 %v313_v13  ;;  %v321_v15 = vmul.f32 %v313_v13, %v313_v13 }
 0x2c7   :  { %322 = vadd.xlane.f32.xlu1 %v321_v15 }
 0x350   :  { %v319_v37 = vpop.xlane.xlu1 %318 }
 0x351   :  { %v320_v38 = vmul.f32 0.0078125, %v319_v37 }
 0x353   :  { %v325_v40 = vmul.f32 %v320_v38, %v320_v38  ;;  %v327_v44 = vsub.f32 %v313_v13, %v320_v38 }
 0x354   :  { %v323_v39 = vpop.xlane.xlu1 %322 }
 0x355   :  { %v324_v41 = vmul.f32 0.0078125, %v323_v39 }
 0x357   :  { %v326_v42 = vsub.f32 %v324_v41, %v325_v40 }
 0x359   :  { %v328_v43 = vadd.f32 1e-05, %v326_v42 }
 0x35b   :  { %736 = vrsqrt.f32 %v328_v43 }
 0x365   :  { %v737_v45 = vpop.eup %736 }
 0x366   :  { %v330_v47 = vmul.f32 %v737_v45, %v327_v44 }
 0x368   :  { %v337_v48 = vmul.f32 %v491_v46, %v330_v47 }
 0x36a   :  { %v344_v49 = vadd.f32 %v492_v0, %v337_v48 }
 0x36c   :  { %v345_v50 = vmax.f32 %v344_v49, 0.0 }
 0x36e   :  { %650 = vmatmul.mubr.f32.vlgmr.msra.gmra.mrb[2].mxu0 %v345_v50 }
 0x441   :  { %v435_v52 = vpop.f32.mrb[2].mxu0 }
 0x442   :  { %v436_v53 = vadd.f32 %v493_v51, %v435_v52  ;;  %v651_v54 = vpop.f32.mrb[3].mxu0 }
 0x444   :  { %441 = vadd.xlane.f32.xlu0 %v436_v53  ;;  %v444_v55 = vmul.f32 %v436_v53, %v436_v53 }
 0x446   :  { %445 = vadd.xlane.f32.xlu1 %v444_v55 }
 0x4d1   :  { %v442_v56 = vpop.xlane.xlu0 %441 }
 0x4d2   :  { %v443_v57 = vmul.f32 0.0078125, %v442_v56 }
 0x4d3   :  { %v446_v58 = vpop.xlane.xlu1 %445 }
 0x4d4   :  { %v448_v59 = vmul.f32 %v443_v57, %v443_v57  ;;  %v447_v60 = vmul.f32 0.0078125, %v446_v58  ;;  %v450_v63 = vsub.f32 %v436_v53, %v443_v57 }
 0x4d6   :  { %v449_v61 = vsub.f32 %v447_v60, %v448_v59 }
 0x4d8   :  { %v451_v62 = vadd.f32 1e-05, %v449_v61 }
 0x4da   :  { %738 = vrsqrt.f32 %v451_v62 }
 0x4e4   :  { %v739_v1 = vpop.eup %738 }
 0x4e5   :  { %v453_v3 = vmul.f32 %v739_v1, %v450_v63 }
 0x4e7   :  { %v460_v5 = vmul.f32 %v494_v2, %v453_v3 }
 0x4e9   :  { %v467_v6 = vadd.f32 %v495_v4, %v460_v5 }
 0x4eb   :  { %v468_v7 = vmax.f32 %v467_v6, 0.0 }
 0x4ed   :  { %469 = vst [vmem:[#allocation10] sm:$0xff] %v468_v7 }
 0x4ee   :  { %839 = shalt.err (!%p836_p8)
}
 0x4ef   :  { %s840_s20 = scalar_lea.hbm %s1074_s13, 128 }
 0x4f0   :  { %p841_p9 = scmp.ne.s32.totalorder %s1074_s13, %s840_s20  ;;  %p844_p10 = scmp.lt.u32.totalorder %s840_s20, %s1074_s13 }
 0x4f2   :  { %p846_p11 = pnand %p844_p10, %p841_p9 }
 0x4f4   :  { %849 = shalt.err (!%p846_p11)
}
 0x4f5   :  { %479 = dma.vmem_to_hbm [thread:$0]  %s477_s1, 128, %s1074_s13, [#allocation4]  }
 0x4f6   :  { %856 = dma.done.wait [#allocation4], 128  }
 0x4f7   :  { %857 = vsyncadd [#allocation4], 4294967168 }
 0x4f8   :  { %483 = vsyncpa [#allocation3], 1 }
 0x4f9   :  { %484 = vsyncpa [#allocation6], 1 }
 0x4fa   :  { %485 = vsyncpa [#allocation9], 1 }
 0x4fb   :  { %486 = vsyncpa [#allocation4], 1 }

</bundles_post_ra>
